<compile_context>
chip_gen: v6e
topology: v6e:2x2x1
jax: 0.10.0
libtpu: 0.0.40
codegen_flags: <defaults>
</compile_context>

<pallas_src>
import math

import jax
import jax.numpy as jnp
from jax import lax
from jax.experimental import pallas as pl
from jax.experimental.pallas import tpu as pltpu

LAYER_NORM_EPS = 1e-12
_INV_SQRT2 = 1.0 / math.sqrt(2.0)


def _round_up(x, m):
    return ((x + m - 1) // m) * m


def _vmem_capacity_bytes():
    """Physical VMEM of the current chip (64 MiB on v7x, 128 MiB on v5e/v6e)."""
    try:
        return int(pltpu.get_tpu_info().vmem_capacity_bytes)
    except Exception:
        return 128 * 1024 * 1024


# ---------------------------------------------------------------------------
# LM prediction head: dense(H,H) -> gelu -> LayerNorm -> decoder(H,V)
# ---------------------------------------------------------------------------
def _lm_head_kernel(x_ref, w1_ref, b1_ref, ln_w_ref, ln_b_ref,
                    w2_ref, b2_ref, o_ref, h_ref):
    # Grid: (row tiles i [parallel], vocab tiles j [arbitrary, innermost]).
    #   x_ref:  (tm, H)                          -- depends on i only
    #   w1_ref: (H, H); b1/ln_w/ln_b: (1, H)     -- grid-invariant (single-buffered)
    #   w2_ref: (H, tn); b2_ref: (1, tn)         -- depend on j only
    #   o_ref:  (tm, tn)
    #   h_ref:  VMEM scratch (tm, H) in the decoder dtype, cached across j.

    @pl.when(pl.program_id(1) == 0)
    def _compute_transform():
        x = x_ref[...].astype(w1_ref.dtype)
        # transform.dense: Linear(H, H), f32 accumulation on the MXU.
        h = jnp.dot(x, w1_ref[...], preferred_element_type=jnp.float32)
        h = h + b1_ref[...].astype(jnp.float32)
        # gelu, erf formulation (matches the torch reference exactly).
        h = h * 0.5 * (1.0 + lax.erf(h * _INV_SQRT2))
        # BertLayerNorm: biased variance over last dim, eps inside the sqrt.
        # One-pass variance (mean(h^2) - u^2), clamped against tiny negative
        # round-off, rsqrt handled by the EUP.
        u = jnp.mean(h, axis=-1, keepdims=True)
        s = jnp.maximum(jnp.mean(h * h, axis=-1, keepdims=True) - u * u, 0.0)
        h = (h - u) * lax.rsqrt(s + LAYER_NORM_EPS)
        h = (ln_w_ref[...].astype(jnp.float32) * h
             + ln_b_ref[...].astype(jnp.float32))
        h_ref[...] = h.astype(h_ref.dtype)

    # decoder: Linear(H, V), one vocab tile per grid step.  h is already in the
    # decoder dtype (no per-step cast).
    logits = jnp.dot(h_ref[...], w2_ref[...], preferred_element_type=jnp.float32)
    logits = logits + b2_ref[...].astype(jnp.float32)
    o_ref[...] = logits.astype(o_ref.dtype)


def pad_decoder_params(params, tile_n=2048):
    """Pre-pad decoder weight/bias to a multiple of tile_n ONCE (outside the
    per-call path) so the per-forward jnp.pad of the full (H, V) matrix goes
    away.  Returns (new_params, true_vocab_size); pass the latter as
    vocab_size= to bert_lm_prediction_head."""
    V = params["w_decoder"].shape[1]
    v_pad = _round_up(V, tile_n)
    if v_pad == V:
        return dict(params), V
    p = dict(params)
    p["w_decoder"] = jnp.pad(params["w_decoder"], ((0, 0), (0, v_pad - V)))
    p["b_decoder"] = jnp.pad(params["b_decoder"].reshape(1, V),
                             ((0, 0), (0, v_pad - V)))
    return p, V


def bert_lm_prediction_head(hidden_states, params, *, tile_m=None, tile_n=None,
                            out_dtype=jnp.float32, vocab_size=None):
    """hidden_states: [B, S, H] -> prediction_scores [B, S, V] (out_dtype)."""
    B, S, H = hidden_states.shape
    V_stored = params["w_decoder"].shape[1]
    V = V_stored if vocab_size is None else vocab_size
    M = B * S
    x = hidden_states.reshape(M, H)

    w_dtype = params["w_dense"].dtype
    # When weights are bf16, stream/hold the row tile at half width too.
    if w_dtype == jnp.bfloat16 and x.dtype == jnp.float32:
        x = x.astype(jnp.bfloat16)

    vmem_cap = _vmem_capacity_bytes()
    is_small_vmem = vmem_cap <= 96 * 1024 * 1024   # v7x-class (64 MiB per TC)

    # Vocab tile: multiple of 128 lanes (lane-dense, unmasked stores).
    if tile_n is None:
        tile_n = min(2048, _round_up(V_stored, 128))
    # Row tile: the decoder-weight slab is re-streamed once per row tile, so
    # make it as large as VMEM allows (perf review #1/#2).
    if tile_m is None:
        m_cap = 512 if is_small_vmem else 1024
        tile_m = min(m_cap, _round_up(M, 8))
        # v7x: keep >= 2 row tiles so the "parallel" axis splits across both TCs.
        if is_small_vmem and M > 256 and _round_up(M, tile_m) // tile_m < 2:
            tile_m = _round_up((M + 1) // 2, 8)

    m_pad = _round_up(M, tile_m)
    v_pad = _round_up(V_stored, tile_n)

    if m_pad != M:
        x = jnp.pad(x, ((0, m_pad - M), (0, 0)))

    w2 = params["w_decoder"]
    b2 = params["b_decoder"].reshape(1, V_stored)
    if v_pad != V_stored:
        # Prefer pre-padding once via pad_decoder_params(); this path pads the
        # full (H, V) matrix on every call.
        w2 = jnp.pad(w2, ((0, 0), (0, v_pad - V_stored)))
        b2 = jnp.pad(b2, ((0, 0), (0, v_pad - V_stored)))

    grid = (m_pad // tile_m, v_pad // tile_n)

    # VMEM budget: double-buffered x / decoder tiles / output, single-buffered
    # grid-invariant transform params, h scratch in the decoder dtype.
    x_isz = jnp.dtype(x.dtype).itemsize
    w_isz = jnp.dtype(w_dtype).itemsize
    o_isz = jnp.dtype(out_dtype).itemsize
    vmem_est = (2 * tile_m * H * x_isz            # x row tiles
                + 2 * H * tile_n * w_isz          # decoder weight tiles
                + 2 * tile_m * tile_n * o_isz     # output tiles
                + 2 * tile_n * w_isz              # decoder bias tiles
                + (H * H + 3 * H) * w_isz         # invariant params (1 buffer)
                + tile_m * H * w_isz)             # h scratch
    vmem_limit = max(32 * 1024 * 1024, int(vmem_est * 3 // 2))
    vmem_limit = int(min(vmem_limit, vmem_cap - 4 * 1024 * 1024))  # clamp to chip

    h_dtype = w2.dtype

    def make_call(single_buffer_invariants):
        inv = ({"pipeline_mode": pl.Buffered(1)}
               if single_buffer_invariants else {})
        grid_spec = pltpu.PrefetchScalarGridSpec(
            num_scalar_prefetch=0,
            grid=grid,
            in_specs=[
                pl.BlockSpec((tile_m, H), lambda i, j: (i, 0)),          # x row tile
                pl.BlockSpec((H, H), lambda i, j: (0, 0), **inv),        # dense weight
                pl.BlockSpec((1, H), lambda i, j: (0, 0), **inv),        # dense bias
                pl.BlockSpec((1, H), lambda i, j: (0, 0), **inv),        # layernorm weight
                pl.BlockSpec((1, H), lambda i, j: (0, 0), **inv),        # layernorm bias
                pl.BlockSpec((H, tile_n), lambda i, j: (0, j)),          # decoder weight tile
                pl.BlockSpec((1, tile_n), lambda i, j: (0, j)),          # decoder bias tile
            ],
            out_specs=pl.BlockSpec((tile_m, tile_n), lambda i, j: (i, j)),
            scratch_shapes=[pltpu.VMEM((tile_m, H), h_dtype)],
        )
        return pl.pallas_call(
            _lm_head_kernel,
            out_shape=jax.ShapeDtypeStruct((m_pad, v_pad), out_dtype),
            grid_spec=grid_spec,
            compiler_params=pltpu.CompilerParams(
                dimension_semantics=("parallel", "arbitrary"),
                vmem_limit_bytes=vmem_limit),
        )

    args = (x, params["w_dense"], params["b_dense"],
            params["ln_w"], params["ln_b"], w2, b2)
    try:
        out = make_call(True)(*args)
    except Exception:
        # Fallback for Pallas/Mosaic versions that reject single-buffering of
        # grid-invariant operands (pl.Buffered(1)); costs only extra VMEM.
        out = make_call(False)(*args)

    return out[:M, :V].reshape(B, S, V)


# ---------------------------------------------------------------------------
# NSP head: Linear(H, 2) on pooled_output.  Negligible FLOPs; per the perf
# review this stays in plain XLA (a padded 128-lane Pallas kernel is pure
# dispatch / pad overhead).
# ---------------------------------------------------------------------------
def seq_relationship_head(pooled_output, params):
    """pooled_output: [B, H] -> seq_relationship_score [B, 2] (float32)."""
    x = pooled_output
    if params["w_seq_rel"].dtype == jnp.bfloat16 and x.dtype == jnp.float32:
        x = x.astype(jnp.bfloat16)
    out = jnp.dot(x, params["w_seq_rel"], preferred_element_type=jnp.float32)
    return out + params["b_seq_rel"].astype(jnp.float32)


def bert_pretraining_heads(sequence_output, pooled_output, params, **lm_kwargs):
    prediction_scores = bert_lm_prediction_head(sequence_output, params, **lm_kwargs)
    seq_relationship_score = seq_relationship_head(pooled_output, params)
    return prediction_scores, seq_relationship_score


# ---------------------------------------------------------------------------
# Parameters & plain-JAX reference
# ---------------------------------------------------------------------------
def init_params(key, hidden_size, vocab_size, dtype=jnp.float32):
    ks = jax.random.split(key, 8)
    sh = 1.0 / math.sqrt(hidden_size)
    return {
        # weights stored as [in, out] (transposed vs nn.Linear.weight) so the
        # kernels compute x @ W directly.
        "w_dense": jax.random.uniform(ks[0], (hidden_size, hidden_size), dtype, -sh, sh),
        "b_dense": jax.random.uniform(ks[1], (1, hidden_size), dtype, -sh, sh),
        # PyTorch inits LayerNorm to ones/zeros and the decoder bias to zeros;
        # use non-trivial values here so the test actually exercises those terms.
        "ln_w": 1.0 + 0.1 * jax.random.normal(ks[2], (1, hidden_size), dtype),
        "ln_b": 0.1 * jax.random.normal(ks[3], (1, hidden_size), dtype),
        "w_decoder": jax.random.uniform(ks[4], (hidden_size, vocab_size), dtype, -sh, sh),
        "b_decoder": 0.1 * jax.random.normal(ks[5], (1, vocab_size), dtype),
        "w_seq_rel": jax.random.uniform(ks[6], (hidden_size, 2), dtype, -sh, sh),
        "b_seq_rel": jax.random.uniform(ks[7], (1, 2), dtype, -sh, sh),
    }


def _reference(sequence_output, pooled_output, params):
    x = sequence_output.astype(jnp.float32)
    h = x @ params["w_dense"].astype(jnp.float32) + params["b_dense"].astype(jnp.float32)
    h = h * 0.5 * (1.0 + lax.erf(h * _INV_SQRT2))
    u = jnp.mean(h, axis=-1, keepdims=True)
    s = jnp.mean((h - u) ** 2, axis=-1, keepdims=True)
    h = (h - u) / jnp.sqrt(s + LAYER_NORM_EPS)
    h = params["ln_w"].astype(jnp.float32) * h + params["ln_b"].astype(jnp.float32)
    pred = h @ params["w_decoder"].astype(jnp.float32) + params["b_decoder"].astype(jnp.float32)
    seq = (pooled_output.astype(jnp.float32) @ params["w_seq_rel"].astype(jnp.float32)
           + params["b_seq_rel"].astype(jnp.float32))
    return pred, seq


if __name__ == "__main__":
    key = jax.random.PRNGKey(0)

    # Small aligned config plus a ragged one that exercises the row / vocab
    # padding paths (vocab not a multiple of 128, rows not a tile multiple).
    configs = [(2, 8, 32, 128), (2, 5, 32, 200)]
    for B, S, H, V in configs:
        k_seq, k_pool, k_p, key = jax.random.split(key, 4)
        sequence_output = jax.random.normal(k_seq, (B, S, H), jnp.float32)
        pooled_output = jax.random.normal(k_pool, (B, H), jnp.float32)
        params = init_params(k_p, H, V)

        pred_ref, seq_ref = _reference(sequence_output, pooled_output, params)

        # Default path (per-call padding where needed).
        pred, seq_rel = bert_pretraining_heads(sequence_output, pooled_output, params)
        pred = jax.block_until_ready(pred)
        seq_rel = jax.block_until_ready(seq_rel)
        assert pred.shape == (B, S, V)
        assert seq_rel.shape == (B, 2)
        assert jnp.allclose(pred, pred_ref, atol=1e-4, rtol=1e-4), "LM head mismatch"
        assert jnp.allclose(seq_rel, seq_ref, atol=1e-4, rtol=1e-4), "NSP head mismatch"

        # Pre-padded decoder weights (no per-call full (H, V) pad copy).
        tile_n = min(2048, _round_up(V, 128))
        padded_params, true_v = pad_decoder_params(params, tile_n=tile_n)
        pred2 = bert_lm_prediction_head(sequence_output, padded_params,
                                        tile_n=tile_n, vocab_size=true_v)
        pred2 = jax.block_until_ready(pred2)
        assert pred2.shape == (B, S, V)
        assert jnp.allclose(pred2, pred_ref, atol=1e-4, rtol=1e-4), "pre-padded LM mismatch"

        # bf16-logits option (halves output HBM writes); loose tolerance.
        pred_bf16 = bert_lm_prediction_head(sequence_output, params,
                                            out_dtype=jnp.bfloat16)
        pred_bf16 = jax.block_until_ready(pred_bf16)
        assert pred_bf16.dtype == jnp.bfloat16
        assert jnp.allclose(pred_bf16.astype(jnp.float32), pred_ref,
                            atol=5e-2, rtol=5e-2), "bf16 LM head mismatch"

    print("KERNEL_OK")
</pallas_src>

<mosaic_0001>
module attributes {stable_mosaic.version = 11 : i64} {
  func.func @_lm_head_kernel(%arg0: i32, %arg1: i32, %arg2: memref<16x32xf32, #tpu.memory_space<vmem>>, %arg3: memref<32x32xf32, #tpu.memory_space<vmem>>, %arg4: memref<1x32xf32, #tpu.memory_space<vmem>>, %arg5: memref<1x32xf32, #tpu.memory_space<vmem>>, %arg6: memref<1x32xf32, #tpu.memory_space<vmem>>, %arg7: memref<32x128xf32, #tpu.memory_space<vmem>>, %arg8: memref<1x128xf32, #tpu.memory_space<vmem>>, %arg9: memref<16x128xf32, #tpu.memory_space<vmem>>, %arg10: memref<16x32xf32, #tpu.memory_space<vmem>>) attributes {dimension_semantics = [#tpu.dimension_semantics<parallel>, #tpu.dimension_semantics<arbitrary>], iteration_bounds = array<i64: 1, 1>, scalar_prefetch = 0 : i64, scratch_operands = 1 : i64, tpu.core_type = #tpu.core_type<tc>, window_params = [{transform_indices = @transform_0, window_bounds = array<i64: 16, 32>}, {pipeline_mode = #tpu.pipeline_mode<synchronous>, transform_indices = @transform_1, window_bounds = array<i64: 32, 32>}, {pipeline_mode = #tpu.pipeline_mode<synchronous>, transform_indices = @transform_2, window_bounds = array<i64: 1, 32>}, {pipeline_mode = #tpu.pipeline_mode<synchronous>, transform_indices = @transform_3, window_bounds = array<i64: 1, 32>}, {pipeline_mode = #tpu.pipeline_mode<synchronous>, transform_indices = @transform_4, window_bounds = array<i64: 1, 32>}, {transform_indices = @transform_5, window_bounds = array<i64: 32, 128>}, {transform_indices = @transform_6, window_bounds = array<i64: 1, 128>}, {transform_indices = @transform_7, window_bounds = array<i64: 16, 128>}]} {
    %c0_i32 = arith.constant 0 : i32
    %0 = arith.cmpi eq, %arg1, %c0_i32 : i32
    %1 = arith.extui %0 : i1 to i32
    %c0_i32_0 = arith.constant 0 : i32
    %2 = arith.cmpi ne, %1, %c0_i32_0 : i32
    scf.if %2 {
      %c0_8 = arith.constant 0 : index
      %c0_9 = arith.constant 0 : index
      %10 = vector.load %arg2[%c0_8, %c0_9] : memref<16x32xf32, #tpu.memory_space<vmem>>, vector<16x32xf32>
      %c0_10 = arith.constant 0 : index
      %c0_11 = arith.constant 0 : index
      %11 = vector.load %arg3[%c0_10, %c0_11] : memref<32x32xf32, #tpu.memory_space<vmem>>, vector<32x32xf32>
      %cst_12 = arith.constant dense<0.000000e+00> : vector<16x32xf32>
      %12 = tpu.matmul %10, %11, %cst_12 {dimension_numbers = #tpu.dot_dimension_numbers<[1], [0], [0], [1], [0, 0, 1, 1], [], []>} : vector<16x32xf32>, vector<32x32xf32>, vector<16x32xf32> -> vector<16x32xf32>
      %c0_13 = arith.constant 0 : index
      %c0_14 = arith.constant 0 : index
      %13 = vector.load %arg4[%c0_13, %c0_14] : memref<1x32xf32, #tpu.memory_space<vmem>>, vector<1x32xf32>
      %14 = vector.broadcast %13 : vector<1x32xf32> to vector<16x32xf32>
      %15 = arith.addf %12, %14 : vector<16x32xf32>
      %cst_15 = arith.constant 5.000000e-01 : f32
      %16 = vector.broadcast %cst_15 : f32 to vector<16x32xf32>
      %17 = arith.mulf %15, %16 : vector<16x32xf32>
      %cst_16 = arith.constant 0.707106769 : f32
      %18 = vector.broadcast %cst_16 : f32 to vector<16x32xf32>
      %19 = arith.mulf %15, %18 : vector<16x32xf32>
      %20 = math.erf %19 : vector<16x32xf32>
      %cst_17 = arith.constant 1.000000e+00 : f32
      %21 = vector.broadcast %cst_17 : f32 to vector<16x32xf32>
      %22 = arith.addf %21, %20 : vector<16x32xf32>
      %23 = arith.mulf %17, %22 : vector<16x32xf32>
      %cst_18 = arith.constant dense<0.000000e+00> : vector<16xf32>
      %24 = vector.multi_reduction <add>, %23, %cst_18 [1] : vector<16x32xf32> to vector<16xf32>
      %25 = vector.shape_cast %24 : vector<16xf32> to vector<16x1xf32>
      %cst_19 = arith.constant 3.200000e+01 : f32
      %26 = vector.broadcast %cst_19 : f32 to vector<16x1xf32>
      %27 = arith.divf %25, %26 : vector<16x1xf32>
      %28 = arith.mulf %23, %23 : vector<16x32xf32>
      %cst_20 = arith.constant dense<0.000000e+00> : vector<16xf32>
      %29 = vector.multi_reduction <add>, %28, %cst_20 [1] : vector<16x32xf32> to vector<16xf32>
      %30 = vector.shape_cast %29 : vector<16xf32> to vector<16x1xf32>
      %cst_21 = arith.constant 3.200000e+01 : f32
      %31 = vector.broadcast %cst_21 : f32 to vector<16x1xf32>
      %32 = arith.divf %30, %31 : vector<16x1xf32>
      %33 = arith.mulf %27, %27 : vector<16x1xf32>
      %34 = arith.subf %32, %33 : vector<16x1xf32>
      %cst_22 = arith.constant 0.000000e+00 : f32
      %35 = vector.broadcast %cst_22 : f32 to vector<16x1xf32>
      %36 = arith.maximumf %34, %35 : vector<16x1xf32>
      %37 = vector.broadcast %27 : vector<16x1xf32> to vector<16x32xf32>
      %38 = arith.subf %23, %37 : vector<16x32xf32>
      %cst_23 = arith.constant 9.99999996E-13 : f32
      %39 = vector.broadcast %cst_23 : f32 to vector<16x1xf32>
      %40 = arith.addf %36, %39 : vector<16x1xf32>
      %41 = math.rsqrt %40 : vector<16x1xf32>
      %42 = vector.broadcast %41 : vector<16x1xf32> to vector<16x32xf32>
      %43 = arith.mulf %38, %42 : vector<16x32xf32>
      %c0_24 = arith.constant 0 : index
      %c0_25 = arith.constant 0 : index
      %44 = vector.load %arg5[%c0_24, %c0_25] : memref<1x32xf32, #tpu.memory_space<vmem>>, vector<1x32xf32>
      %45 = vector.broadcast %44 : vector<1x32xf32> to vector<16x32xf32>
      %46 = arith.mulf %45, %43 : vector<16x32xf32>
      %c0_26 = arith.constant 0 : index
      %c0_27 = arith.constant 0 : index
      %47 = vector.load %arg6[%c0_26, %c0_27] : memref<1x32xf32, #tpu.memory_space<vmem>>, vector<1x32xf32>
      %48 = vector.broadcast %47 : vector<1x32xf32> to vector<16x32xf32>
      %49 = arith.addf %46, %48 : vector<16x32xf32>
      %c0_28 = arith.constant 0 : index
      %c0_29 = arith.constant 0 : index
      %50 = vector.load %arg10[%c0_28, %c0_29] : memref<16x32xf32, #tpu.memory_space<vmem>>, vector<16x32xf32>
      tpu.vector_store %arg10[%c0_28, %c0_29], %49 {strides = array<i32>} : memref<16x32xf32, #tpu.memory_space<vmem>>, vector<16x32xf32>,
    } else {
    }
    %c0 = arith.constant 0 : index
    %c0_1 = arith.constant 0 : index
    %3 = vector.load %arg10[%c0, %c0_1] : memref<16x32xf32, #tpu.memory_space<vmem>>, vector<16x32xf32>
    %c0_2 = arith.constant 0 : index
    %c0_3 = arith.constant 0 : index
    %4 = vector.load %arg7[%c0_2, %c0_3] : memref<32x128xf32, #tpu.memory_space<vmem>>, vector<32x128xf32>
    %cst = arith.constant dense<0.000000e+00> : vector<16x128xf32>
    %5 = tpu.matmul %3, %4, %cst {dimension_numbers = #tpu.dot_dimension_numbers<[1], [0], [0], [1], [0, 0, 1, 1], [], []>} : vector<16x32xf32>, vector<32x128xf32>, vector<16x128xf32> -> vector<16x128xf32>
    %c0_4 = arith.constant 0 : index
    %c0_5 = arith.constant 0 : index
    %6 = vector.load %arg8[%c0_4, %c0_5] : memref<1x128xf32, #tpu.memory_space<vmem>>, vector<1x128xf32>
    %7 = vector.broadcast %6 : vector<1x128xf32> to vector<16x128xf32>
    %8 = arith.addf %5, %7 : vector<16x128xf32>
    %c0_6 = arith.constant 0 : index
    %c0_7 = arith.constant 0 : index
    %9 = vector.load %arg9[%c0_6, %c0_7] : memref<16x128xf32, #tpu.memory_space<vmem>>, vector<16x128xf32>
    tpu.vector_store %arg9[%c0_6, %c0_7], %8 {strides = array<i32>} : memref<16x128xf32, #tpu.memory_space<vmem>>, vector<16x128xf32>,
    return
  }
  func.func @transform_0(%arg0: i32, %arg1: i32) -> (i32, i32) {
    %c0_i32 = arith.constant 0 : i32
    %c0_i32_0 = arith.constant 0 : i32
    return %arg0, %c0_i32 : i32, i32
  }
  func.func @transform_1(%arg0: i32, %arg1: i32) -> (i32, i32) {
    %c0_i32 = arith.constant 0 : i32
    %c0_i32_0 = arith.constant 0 : i32
    %c0_i32_1 = arith.constant 0 : i32
    return %c0_i32, %c0_i32_0 : i32, i32
  }
  func.func @transform_2(%arg0: i32, %arg1: i32) -> (i32, i32) {
    %c0_i32 = arith.constant 0 : i32
    %c0_i32_0 = arith.constant 0 : i32
    %c0_i32_1 = arith.constant 0 : i32
    return %c0_i32, %c0_i32_0 : i32, i32
  }
  func.func @transform_3(%arg0: i32, %arg1: i32) -> (i32, i32) {
    %c0_i32 = arith.constant 0 : i32
    %c0_i32_0 = arith.constant 0 : i32
    %c0_i32_1 = arith.constant 0 : i32
    return %c0_i32, %c0_i32_0 : i32, i32
  }
  func.func @transform_4(%arg0: i32, %arg1: i32) -> (i32, i32) {
    %c0_i32 = arith.constant 0 : i32
    %c0_i32_0 = arith.constant 0 : i32
    %c0_i32_1 = arith.constant 0 : i32
    return %c0_i32, %c0_i32_0 : i32, i32
  }
  func.func @transform_5(%arg0: i32, %arg1: i32) -> (i32, i32) {
    %c0_i32 = arith.constant 0 : i32
    %c0_i32_0 = arith.constant 0 : i32
    return %c0_i32, %arg1 : i32, i32
  }
  func.func @transform_6(%arg0: i32, %arg1: i32) -> (i32, i32) {
    %c0_i32 = arith.constant 0 : i32
    %c0_i32_0 = arith.constant 0 : i32
    return %c0_i32, %arg1 : i32, i32
  }
  func.func @transform_7(%arg0: i32, %arg1: i32) -> (i32, i32) {
    %c0_i32 = arith.constant 0 : i32
    return %arg0, %arg1 : i32, i32
  }
}

module attributes {stable_mosaic.version = 11 : i64} {
  func.func @_lm_head_kernel(%arg0: i32, %arg1: i32, %arg2: memref<16x32xf32, #tpu.memory_space<vmem>>, %arg3: memref<32x32xf32, #tpu.memory_space<vmem>>, %arg4: memref<1x32xf32, #tpu.memory_space<vmem>>, %arg5: memref<1x32xf32, #tpu.memory_space<vmem>>, %arg6: memref<1x32xf32, #tpu.memory_space<vmem>>, %arg7: memref<32x128xf32, #tpu.memory_space<vmem>>, %arg8: memref<1x128xf32, #tpu.memory_space<vmem>>, %arg9: memref<16x128xf32, #tpu.memory_space<vmem>>, %arg10: memref<16x32xf32, #tpu.memory_space<vmem>>) attributes {dimension_semantics = [#tpu.dimension_semantics<parallel>, #tpu.dimension_semantics<arbitrary>], iteration_bounds = array<i64: 1, 1>, scalar_prefetch = 0 : i64, scratch_operands = 1 : i64, tpu.core_type = #tpu.core_type<tc>, window_params = [{transform_indices = @transform_0, window_bounds = array<i64: 16, 32>}, {pipeline_mode = #tpu.pipeline_mode<synchronous>, transform_indices = @transform_1, window_bounds = array<i64: 32, 32>}, {pipeline_mode = #tpu.pipeline_mode<synchronous>, transform_indices = @transform_2, window_bounds = array<i64: 1, 32>}, {pipeline_mode = #tpu.pipeline_mode<synchronous>, transform_indices = @transform_3, window_bounds = array<i64: 1, 32>}, {pipeline_mode = #tpu.pipeline_mode<synchronous>, transform_indices = @transform_4, window_bounds = array<i64: 1, 32>}, {transform_indices = @transform_5, window_bounds = array<i64: 32, 128>}, {transform_indices = @transform_6, window_bounds = array<i64: 1, 128>}, {transform_indices = @transform_7, window_bounds = array<i64: 16, 128>}]} {
    %c0_i32 = arith.constant 0 : i32
    %0 = arith.cmpi eq, %arg1, %c0_i32 : i32
    %1 = arith.extui %0 : i1 to i32
    %c0_i32_0 = arith.constant 0 : i32
    %2 = arith.cmpi ne, %1, %c0_i32_0 : i32
    scf.if %2 {
      %c0_8 = arith.constant 0 : index
      %c0_9 = arith.constant 0 : index
      %10 = vector.load %arg2[%c0_8, %c0_9] : memref<16x32xf32, #tpu.memory_space<vmem>>, vector<16x32xf32>
      %c0_10 = arith.constant 0 : index
      %c0_11 = arith.constant 0 : index
      %11 = vector.load %arg3[%c0_10, %c0_11] : memref<32x32xf32, #tpu.memory_space<vmem>>, vector<32x32xf32>
      %cst_12 = arith.constant dense<0.000000e+00> : vector<16x32xf32>
      %12 = tpu.matmul %10, %11, %cst_12 {dimension_numbers = #tpu.dot_dimension_numbers<[1], [0], [0], [1], [0, 0, 1, 1], [], []>} : vector<16x32xf32>, vector<32x32xf32>, vector<16x32xf32> -> vector<16x32xf32>
      %c0_13 = arith.constant 0 : index
      %c0_14 = arith.constant 0 : index
      %13 = vector.load %arg4[%c0_13, %c0_14] : memref<1x32xf32, #tpu.memory_space<vmem>>, vector<1x32xf32>
      %14 = vector.broadcast %13 : vector<1x32xf32> to vector<16x32xf32>
      %15 = arith.addf %12, %14 : vector<16x32xf32>
      %cst_15 = arith.constant 5.000000e-01 : f32
      %16 = vector.broadcast %cst_15 : f32 to vector<16x32xf32>
      %17 = arith.mulf %15, %16 : vector<16x32xf32>
      %cst_16 = arith.constant 0.707106769 : f32
      %18 = vector.broadcast %cst_16 : f32 to vector<16x32xf32>
      %19 = arith.mulf %15, %18 : vector<16x32xf32>
      %20 = math.erf %19 : vector<16x32xf32>
      %cst_17 = arith.constant 1.000000e+00 : f32
      %21 = vector.broadcast %cst_17 : f32 to vector<16x32xf32>
      %22 = arith.addf %21, %20 : vector<16x32xf32>
      %23 = arith.mulf %17, %22 : vector<16x32xf32>
      %cst_18 = arith.constant dense<0.000000e+00> : vector<16xf32>
      %24 = vector.multi_reduction <add>, %23, %cst_18 [1] : vector<16x32xf32> to vector<16xf32>
      %25 = vector.shape_cast %24 : vector<16xf32> to vector<16x1xf32>
      %cst_19 = arith.constant 3.200000e+01 : f32
      %26 = vector.broadcast %cst_19 : f32 to vector<16x1xf32>
      %27 = arith.divf %25, %26 : vector<16x1xf32>
      %28 = arith.mulf %23, %23 : vector<16x32xf32>
      %cst_20 = arith.constant dense<0.000000e+00> : vector<16xf32>
      %29 = vector.multi_reduction <add>, %28, %cst_20 [1] : vector<16x32xf32> to vector<16xf32>
      %30 = vector.shape_cast %29 : vector<16xf32> to vector<16x1xf32>
      %cst_21 = arith.constant 3.200000e+01 : f32
      %31 = vector.broadcast %cst_21 : f32 to vector<16x1xf32>
      %32 = arith.divf %30, %31 : vector<16x1xf32>
      %33 = arith.mulf %27, %27 : vector<16x1xf32>
      %34 = arith.subf %32, %33 : vector<16x1xf32>
      %cst_22 = arith.constant 0.000000e+00 : f32
      %35 = vector.broadcast %cst_22 : f32 to vector<16x1xf32>
      %36 = arith.maximumf %34, %35 : vector<16x1xf32>
      %37 = vector.broadcast %27 : vector<16x1xf32> to vector<16x32xf32>
      %38 = arith.subf %23, %37 : vector<16x32xf32>
      %cst_23 = arith.constant 9.99999996E-13 : f32
      %39 = vector.broadcast %cst_23 : f32 to vector<16x1xf32>
      %40 = arith.addf %36, %39 : vector<16x1xf32>
      %41 = math.rsqrt %40 : vector<16x1xf32>
      %42 = vector.broadcast %41 : vector<16x1xf32> to vector<16x32xf32>
      %43 = arith.mulf %38, %42 : vector<16x32xf32>
      %c0_24 = arith.constant 0 : index
      %c0_25 = arith.constant 0 : index
      %44 = vector.load %arg5[%c0_24, %c0_25] : memref<1x32xf32, #tpu.memory_space<vmem>>, vector<1x32xf32>
      %45 = vector.broadcast %44 : vector<1x32xf32> to vector<16x32xf32>
      %46 = arith.mulf %45, %43 : vector<16x32xf32>
      %c0_26 = arith.constant 0 : index
      %c0_27 = arith.constant 0 : index
      %47 = vector.load %arg6[%c0_26, %c0_27] : memref<1x32xf32, #tpu.memory_space<vmem>>, vector<1x32xf32>
      %48 = vector.broadcast %47 : vector<1x32xf32> to vector<16x32xf32>
      %49 = arith.addf %46, %48 : vector<16x32xf32>
      %c0_28 = arith.constant 0 : index
      %c0_29 = arith.constant 0 : index
      %50 = vector.load %arg10[%c0_28, %c0_29] : memref<16x32xf32, #tpu.memory_space<vmem>>, vector<16x32xf32>
      tpu.vector_store %arg10[%c0_28, %c0_29], %49 {strides = array<i32>} : memref<16x32xf32, #tpu.memory_space<vmem>>, vector<16x32xf32>,
    } else {
    }
    %c0 = arith.constant 0 : index
    %c0_1 = arith.constant 0 : index
    %3 = vector.load %arg10[%c0, %c0_1] : memref<16x32xf32, #tpu.memory_space<vmem>>, vector<16x32xf32>
    %c0_2 = arith.constant 0 : index
    %c0_3 = arith.constant 0 : index
    %4 = vector.load %arg7[%c0_2, %c0_3] : memref<32x128xf32, #tpu.memory_space<vmem>>, vector<32x128xf32>
    %cst = arith.constant dense<0.000000e+00> : vector<16x128xf32>
    %5 = tpu.matmul %3, %4, %cst {dimension_numbers = #tpu.dot_dimension_numbers<[1], [0], [0], [1], [0, 0, 1, 1], [], []>} : vector<16x32xf32>, vector<32x128xf32>, vector<16x128xf32> -> vector<16x128xf32>
    %c0_4 = arith.constant 0 : index
    %c0_5 = arith.constant 0 : index
    %6 = vector.load %arg8[%c0_4, %c0_5] : memref<1x128xf32, #tpu.memory_space<vmem>>, vector<1x128xf32>
    %7 = vector.broadcast %6 : vector<1x128xf32> to vector<16x128xf32>
    %8 = arith.addf %5, %7 : vector<16x128xf32>
    %c0_6 = arith.constant 0 : index
    %c0_7 = arith.constant 0 : index
    %9 = vector.load %arg9[%c0_6, %c0_7] : memref<16x128xf32, #tpu.memory_space<vmem>>, vector<16x128xf32>
    tpu.vector_store %arg9[%c0_6, %c0_7], %8 {strides = array<i32>} : memref<16x128xf32, #tpu.memory_space<vmem>>, vector<16x128xf32>,
    return
  }
  func.func @transform_0(%arg0: i32, %arg1: i32) -> (i32, i32) {
    %c0_i32 = arith.constant 0 : i32
    %c0_i32_0 = arith.constant 0 : i32
    return %arg0, %c0_i32 : i32, i32
  }
  func.func @transform_1(%arg0: i32, %arg1: i32) -> (i32, i32) {
    %c0_i32 = arith.constant 0 : i32
    %c0_i32_0 = arith.constant 0 : i32
    %c0_i32_1 = arith.constant 0 : i32
    return %c0_i32, %c0_i32_0 : i32, i32
  }
  func.func @transform_2(%arg0: i32, %arg1: i32) -> (i32, i32) {
    %c0_i32 = arith.constant 0 : i32
    %c0_i32_0 = arith.constant 0 : i32
    %c0_i32_1 = arith.constant 0 : i32
    return %c0_i32, %c0_i32_0 : i32, i32
  }
  func.func @transform_3(%arg0: i32, %arg1: i32) -> (i32, i32) {
    %c0_i32 = arith.constant 0 : i32
    %c0_i32_0 = arith.constant 0 : i32
    %c0_i32_1 = arith.constant 0 : i32
    return %c0_i32, %c0_i32_0 : i32, i32
  }
  func.func @transform_4(%arg0: i32, %arg1: i32) -> (i32, i32) {
    %c0_i32 = arith.constant 0 : i32
    %c0_i32_0 = arith.constant 0 : i32
    %c0_i32_1 = arith.constant 0 : i32
    return %c0_i32, %c0_i32_0 : i32, i32
  }
  func.func @transform_5(%arg0: i32, %arg1: i32) -> (i32, i32) {
    %c0_i32 = arith.constant 0 : i32
    %c0_i32_0 = arith.constant 0 : i32
    return %c0_i32, %arg1 : i32, i32
  }
  func.func @transform_6(%arg0: i32, %arg1: i32) -> (i32, i32) {
    %c0_i32 = arith.constant 0 : i32
    %c0_i32_0 = arith.constant 0 : i32
    return %c0_i32, %arg1 : i32, i32
  }
  func.func @transform_7(%arg0: i32, %arg1: i32) -> (i32, i32) {
    %c0_i32 = arith.constant 0 : i32
    return %arg0, %arg1 : i32, i32
  }
}

</mosaic_0001>

<bundles_post_ra>
// kernel: tpu_custom_call.1
= control target key start
LH: loop header
LB: loop body
LE: loop exit
PB: predicated region body
PF: predicated region fallthrough
CT: control target
= control target key end

     0   :  { %12 = vsyncpa [#allocation4], 0  ;;  %s579_s0 = inlined_call_operand.hbm [shape: f32[16,32], index: 0, kind: input, shape index: {}]   ;;  %s580_s1 = inlined_call_operand.hbm [shape: f32[32,32], index: 1, kind: input, shape index: {}]   ;;  %s581_s2 = inlined_call_operand.vmem [shape: f32[1,32], index: 2, kind: input, shape index: {}]   ;;  %s582_s3 = inlined_call_operand.vmem [shape: f32[1,32], index: 3, kind: input, shape index: {}]   ;;  %s583_s4 = inlined_call_operand.vmem [shape: f32[1,32], index: 4, kind: input, shape index: {}]   ;;  %s584_s5 = inlined_call_operand.hbm [shape: f32[32,128], index: 5, kind: input, shape index: {}]   ;;  %s585_s6 = inlined_call_operand.vmem [shape: f32[1,128], index: 6, kind: input, shape index: {}]   ;;  %s586_s7 = inlined_call_operand.hbm [shape: f32[16,128], index: 7, kind: output, shape index: {}]  }
   0x1   :  { %13 = vsyncpa [#allocation7], 0 }
   0x2   :  { %14 = vsyncpa [#allocation5], 0  ;;  %s487_s24 = smov [#allocation6]   ;;  %s488_s26 = smov [#allocation3]  }
   0x3   :  { %s32_s25 = sshll.u32 %s487_s24, 4  ;;  %s20_s27 = sshll.u32 %s488_s26, 4  ;;  %s33_s25 = int_to_ptr.vmem [resolvable:$true] %s32_s25  ;;  %s21_s27 = int_to_ptr.vmem [resolvable:$true] %s20_s27 }
   0x4   :  { %s409_s28 = scalar_lea.vmem %s33_s25, 512  ;;  %p414_p1 = scmp.lt.s32.totalorder %s33_s25, %s33_s25 }
   0x5   :  { %p410_p0 = scmp.ne.s32.totalorder %s33_s25, %s409_s28  ;;  %p415_p2 = scmp.lt.s32.totalorder %s409_s28, %s409_s28 }
   0x7   :  { %p416_p3 = por %p415_p2, %p414_p1 }
   0x9   :  { %p417_p4 = pnand %p416_p3, %p410_p0 }
   0xb   :  { %420 = shalt.err (!%p417_p4)
}
   0xc   :  { %s489_s29 = smov 128   ;;  %s490_s30 = smov 8  }
   0xd   :  { %38 = dma.hbm_to_vmem [thread:$0]  %s580_s1, 512, %s33_s25, [#allocation7], %s489_s29, %s489_s29, %s490_s30  }
   0xe   :  { %s429_s10 = scalar_lea.vmem %s21_s27, 256  ;;  %p434_p6 = scmp.lt.s32.totalorder %s21_s27, %s21_s27 }
   0xf   :  { %p430_p5 = scmp.ne.s32.totalorder %s21_s27, %s429_s10  ;;  %p435_p7 = scmp.lt.s32.totalorder %s429_s10, %s429_s10 }
  0x11   :  { %p436_p8 = por %p435_p7, %p434_p6 }
  0x13   :  { %p437_p9 = pnand %p436_p8, %p430_p5 }
  0x15   :  { %440 = shalt.err (!%p437_p9)
}
  0x16   :  { %26 = dma.hbm_to_vmem [thread:$0]  %s579_s0, 256, %s21_s27, [#allocation4], %s489_s29, %s489_s29, %s490_s30  }
  0x17   :  { %s491_s13 = smov [#allocation8]  }
  0x18   :  { %s50_s14 = sshll.u32 %s491_s13, 4  ;;  %s51_s14 = int_to_ptr.vmem [resolvable:$true] %s50_s14 }
  0x19   :  { %s449_s15 = scalar_lea.vmem %s51_s14, 512  ;;  %p454_p11 = scmp.lt.s32.totalorder %s51_s14, %s51_s14 }
  0x1a   :  { %p450_p10 = scmp.ne.s32.totalorder %s51_s14, %s449_s15  ;;  %p455_p12 = scmp.lt.s32.totalorder %s449_s15, %s449_s15 }
  0x1c   :  { %p456_p13 = por %p455_p12, %p454_p11 }
  0x1e   :  { %p457_p0 = pnand %p456_p13, %p450_p10 }
  0x20   :  { %460 = shalt.err (!%p457_p0)
}
  0x21   :  { %56 = dma.hbm_to_vmem [thread:$0]  %s584_s5, 512, %s51_s14, [#allocation7], %s489_s29, %s489_s29, %s490_s30  }
  0x22   :  { %481 = dma.done.wait [#allocation4], 256  }
  0x23   :  { %482 = vsyncadd [#allocation4], 4294967040 }
  0x24   :  { %483 = dma.done.wait [#allocation7], 1024  }
  0x25   :  { %484 = vsyncadd [#allocation7], 4294966272  ;;  %vm85_vm0 = vcmask 261120   ;;  %v77_v0 = vld [vmem:[#allocation6 + $0x18] sm:$0xff]  ;;  %v76_v1 = vld [vmem:[#allocation6 + $0x10] sm:$0xff] }
  0x26   :  { %365 = vmatprep.subr.mxu0 %v77_v0  ;;  %v72_v2 = vld [vmem:[#allocation3] sm:$0xff]  ;;  %v75_v3 = vld [vmem:[#allocation6 + $0x8] sm:$0xff]  ;;  %v74_v4 = vld [vmem:[#allocation6] sm:$0xff] }
  0x27   :  { %366 = vmatpush3.msra.mxu0 %v77_v0  ;;  %373 = vmatprep.mubr.msk.f32.mxu0 %vm85_vm0, %v72_v2  ;;  %v73_v5 = vld [vmem:[#allocation3 + $0x8] sm:$0xff]  ;;  %v345_v6 = vld [vmem:[%s581_s2] ss:$0 sm:$0xff]  ;;  %v234_v28 = vld [vmem:[#allocation8 + $0x10] sm:$0xff] }
  0x28   :  { %367 = vmatprep.subr.mxu0 %v76_v1  ;;  %v235_v27 = vld [vmem:[#allocation8 + $0x18] sm:$0xff]  ;;  %v233_v29 = vld [vmem:[#allocation8 + $0x8] sm:$0xff]  ;;  %v232_v30 = vld [vmem:[#allocation8] sm:$0xff] }
  0x29   :  { %368 = vmatpush3.msra.mxu0 %v76_v1  ;;  %376 = vmatprep.subr.mxu1 %v235_v27  ;;  %v348_v49 = vld [vmem:[%s582_s3] ss:$0 sm:$0xff] }
  0x2a   :  { %369 = vmatprep.subr.mxu0 %v75_v3  ;;  %377 = vmatpush3.msra.mxu1 %v235_v27  ;;  %v349_v51 = vld [vmem:[%s583_s4] ss:$0 sm:$0xff]  ;;  %s492_s4 = smov [#allocation9]  }
  0x2b   :  { %370 = vmatpush3.msra.mxu0 %v75_v3  ;;  %378 = vmatprep.subr.mxu1 %v234_v28  ;;  %v350_v61 = vld [vmem:[%s585_s6] ss:$0 sm:$0xff]  ;;  %s332_s21 = sshll.u32 %s492_s4, 4  ;;  %s333_s21 = int_to_ptr.vmem [resolvable:$true] %s332_s21 }
  0x2c   :  { %371 = vmatprep.subr.mxu0 %v74_v4  ;;  %379 = vmatpush3.msra.mxu1 %v234_v28  ;;  %s461_s22 = scalar_lea.vmem %s333_s21, 256  ;;  %p466_p2 = scmp.lt.s32.totalorder %s333_s21, %s333_s21 }
  0x2d   :  { %372 = vmatpush3.msra.mxu0 %v74_v4  ;;  %380 = vmatprep.subr.mxu1 %v233_v29  ;;  %p462_p1 = scmp.ne.s32.totalorder %s333_s21, %s461_s22  ;;  %p467_p3 = scmp.lt.s32.totalorder %s461_s22, %s461_s22 }
  0x2e   :  { %374 = vmatmul.mubr.msk.f32.vlgmr.msra.gmra.mxu0 %vm85_vm0, %v73_v5  ;;  %381 = vmatpush3.msra.mxu1 %v233_v29 }
  0x2f   :  { %382 = vmatprep.subr.mxu1 %v232_v30  ;;  %p468_p4 = por %p467_p3, %p466_p2 }
  0x30   :  { %383 = vmatpush3.msra.mxu1 %v232_v30 }
  0x31   :  { %p469_p5 = pnand %p468_p4, %p462_p1 }
  0xee   :  { %v375_v7 = vpop.f32.mrf.mxu0 }
  0xef   :  { %v164_v8 = vadd.f32 %v375_v7, %v345_v6 }
  0xf0   :  { %v158_v9 = vpop.f32.mrf.mxu0 }
  0xf1   :  { %v170_v10 = vmul.f32 0.70710677, %v164_v8  ;;  %v159_v11 = vadd.f32 %v345_v6, %v158_v9  ;;  %v168_v16 = vmul.f32 0.5, %v164_v8 }
  0xf3   :  { %393 = verf.f32 %v170_v10  ;;  %v169_v12 = vmul.f32 0.70710677, %v159_v11  ;;  %v167_v17 = vmul.f32 0.5, %v159_v11 }
  0xf5   :  { %395 = verf.f32 %v169_v12 }
 0x100   :  { %v394_v13 = vpop.eup %393 }
 0x101   :  { %v174_v14 = vadd.f32 1.0, %v394_v13 }
 0x102   :  { %v396_v15 = vpop.eup %395 }
 0x103   :  { %v173_v18 = vadd.f32 1.0, %v396_v15  ;;  %v176_v19 = vmul.f32 %v174_v14, %v168_v16 }
 0x105   :  { %v175_v20 = vmul.f32 %v173_v18, %v167_v17  ;;  %v187_v24 = vmul.f32 %v176_v19, %v176_v19  ;;  %v180_v25 = vsel %vm85_vm0, %v176_v19, 0.0 }
 0x107   :  { %v177_v21 = vsel %vm85_vm0, %v175_v20, 0.0  ;;  %v186_v22 = vmul.f32 %v175_v20, %v175_v20  ;;  %v191_v26 = vsel %vm85_vm0, %v187_v24, 0.0 }
 0x108   :  { %178 = vadd.xlane.f32.xlu0 %v177_v21 }
 0x109   :  { %v188_v23 = vsel %vm85_vm0, %v186_v22, 0.0 }
 0x10a   :  { %189 = vadd.xlane.f32.xlu1 %v188_v23 }
 0x10c   :  { %181 = vadd.xlane.f32.xlu0 %v180_v25 }
 0x10e   :  { %192 = vadd.xlane.f32.xlu1 %v191_v26 }
 0x191   :  { %v179_v31 = vpop.xlane.xlu0 %178 }
 0x192   :  { %v184_v32 = vmul.f32 0.03125, %v179_v31 }
 0x193   :  { %v190_v33 = vpop.xlane.xlu1 %189 }
 0x194   :  { %v196_v34 = vmul.f32 %v184_v32, %v184_v32  ;;  %v194_v35 = vmul.f32 0.03125, %v190_v33  ;;  %v202_v47 = vsub.f32 %v175_v20, %v184_v32 }
 0x195   :  { %v182_v36 = vpop.xlane.xlu0 %181 }
 0x196   :  { %v198_v37 = vsub.f32 %v194_v35, %v196_v34  ;;  %v185_v38 = vmul.f32 0.03125, %v182_v36 }
 0x197   :  { %v193_v39 = vpop.xlane.xlu1 %192 }
 0x198   :  { %v200_v40 = vmax.f32 %v198_v37, 0.0  ;;  %v197_v41 = vmul.f32 %v185_v38, %v185_v38  ;;  %v195_v42 = vmul.f32 0.03125, %v193_v39  ;;  %v203_v53 = vsub.f32 %v176_v19, %v185_v38 }
 0x19a   :  { %v204_v43 = vadd.f32 1e-12, %v200_v40  ;;  %v199_v44 = vsub.f32 %v195_v42, %v197_v41 }
 0x19c   :  { %397 = vrsqrt.f32 %v204_v43  ;;  %v201_v45 = vmax.f32 %v199_v44, 0.0 }
 0x19e   :  { %v205_v46 = vadd.f32 1e-12, %v201_v45 }
 0x1a0   :  { %399 = vrsqrt.f32 %v205_v46 }
 0x1a9   :  { %v398_v48 = vpop.eup %397 }
 0x1aa   :  { %v208_v50 = vmul.f32 %v398_v48, %v202_v47 }
 0x1ac   :  { %v217_v52 = vmul.f32 %v348_v49, %v208_v50 }
 0x1ad   :  { %v400_v54 = vpop.eup %399 }
 0x1ae   :  { %v226_v55 = vadd.f32 %v349_v51, %v217_v52  ;;  %v209_v56 = vmul.f32 %v400_v54, %v203_v53 }
 0x1b0   :  { %228 = vst.msk [vmem:[#allocation2] sm:$0xff] %vm85_vm0, %v226_v55  ;;  %v218_v57 = vmul.f32 %v348_v49, %v209_v56 }
 0x1b2   :  { %v227_v58 = vadd.f32 %v349_v51, %v218_v57 }
 0x1b4   :  { %229 = vst.msk [vmem:[#allocation2 + $0x8] sm:$0xff] %vm85_vm0, %v227_v58 }
 0x1b7   :  { %v230_v59 = vld [vmem:[#allocation2] sm:$0xff] }
 0x1b8   :  { %384 = vmatprep.mubr.msk.f32.mxu1 %vm85_vm0, %v230_v59 }
 0x1bb   :  { %v231_v60 = vld [vmem:[#allocation2 + $0x8] sm:$0xff] }
 0x1bc   :  { %385 = vmatmul.mubr.msk.f32.vlgmr.msra.gmra.mxu1 %vm85_vm0, %v231_v60 }
 0x27c   :  { %v386_v62 = vpop.f32.mrf.mxu1 }
 0x27d   :  { %v322_v63 = vadd.f32 %v386_v62, %v350_v61 }
 0x27e   :  { %v316_v0 = vpop.f32.mrf.mxu1 }
 0x27f   :  { %326 = vst [vmem:[#allocation9 + $0x8] sm:$0xff] %v322_v63  ;;  %v317_v1 = vadd.f32 %v350_v61, %v316_v0 }
 0x281   :  { %325 = vst [vmem:[#allocation9] sm:$0xff] %v317_v1 }
 0x282   :  { %472 = shalt.err (!%p469_p5)
}
 0x283   :  { %338 = dma.vmem_to_hbm [thread:$0]  %s333_s21, 256, %s586_s7, [#allocation5], %s489_s29, %s489_s29, %s490_s30  }
 0x284   :  { %485 = dma.done.wait [#allocation5], 256  }
 0x285   :  { %486 = vsyncadd [#allocation5], 4294967040 }
 0x286   :  { %342 = vsyncpa [#allocation4], 1 }
 0x287   :  { %343 = vsyncpa [#allocation7], 1 }
 0x288   :  { %344 = vsyncpa [#allocation5], 1 }

// kernel: tpu_custom_call.1
= control target key start
LH: loop header
LB: loop body
LE: loop exit
PB: predicated region body
PF: predicated region fallthrough
CT: control target
= control target key end

     0   :  { %12 = vsyncpa [#allocation4], 0  ;;  %s579_s0 = inlined_call_operand.hbm [shape: f32[16,32], index: 0, kind: input, shape index: {}]   ;;  %s580_s1 = inlined_call_operand.hbm [shape: f32[32,32], index: 1, kind: input, shape index: {}]   ;;  %s581_s2 = inlined_call_operand.vmem [shape: f32[1,32], index: 2, kind: input, shape index: {}]   ;;  %s582_s3 = inlined_call_operand.vmem [shape: f32[1,32], index: 3, kind: input, shape index: {}]   ;;  %s583_s4 = inlined_call_operand.vmem [shape: f32[1,32], index: 4, kind: input, shape index: {}]   ;;  %s584_s5 = inlined_call_operand.hbm [shape: f32[32,128], index: 5, kind: input, shape index: {}]   ;;  %s585_s6 = inlined_call_operand.vmem [shape: f32[1,128], index: 6, kind: input, shape index: {}]   ;;  %s586_s7 = inlined_call_operand.hbm [shape: f32[16,128], index: 7, kind: output, shape index: {}]  }
   0x1   :  { %13 = vsyncpa [#allocation7], 0 }
   0x2   :  { %14 = vsyncpa [#allocation5], 0  ;;  %s487_s24 = smov [#allocation6]   ;;  %s488_s26 = smov [#allocation3]  }
   0x3   :  { %s32_s25 = sshll.u32 %s487_s24, 4  ;;  %s20_s27 = sshll.u32 %s488_s26, 4  ;;  %s33_s25 = int_to_ptr.vmem [resolvable:$true] %s32_s25  ;;  %s21_s27 = int_to_ptr.vmem [resolvable:$true] %s20_s27 }
   0x4   :  { %s409_s28 = scalar_lea.vmem %s33_s25, 512  ;;  %p414_p1 = scmp.lt.s32.totalorder %s33_s25, %s33_s25 }
   0x5   :  { %p410_p0 = scmp.ne.s32.totalorder %s33_s25, %s409_s28  ;;  %p415_p2 = scmp.lt.s32.totalorder %s409_s28, %s409_s28 }
   0x7   :  { %p416_p3 = por %p415_p2, %p414_p1 }
   0x9   :  { %p417_p4 = pnand %p416_p3, %p410_p0 }
   0xb   :  { %420 = shalt.err (!%p417_p4)
}
   0xc   :  { %s489_s29 = smov 128   ;;  %s490_s30 = smov 8  }
   0xd   :  { %38 = dma.hbm_to_vmem [thread:$0]  %s580_s1, 512, %s33_s25, [#allocation7], %s489_s29, %s489_s29, %s490_s30  }
   0xe   :  { %s429_s10 = scalar_lea.vmem %s21_s27, 256  ;;  %p434_p6 = scmp.lt.s32.totalorder %s21_s27, %s21_s27 }
   0xf   :  { %p430_p5 = scmp.ne.s32.totalorder %s21_s27, %s429_s10  ;;  %p435_p7 = scmp.lt.s32.totalorder %s429_s10, %s429_s10 }
  0x11   :  { %p436_p8 = por %p435_p7, %p434_p6 }
  0x13   :  { %p437_p9 = pnand %p436_p8, %p430_p5 }
  0x15   :  { %440 = shalt.err (!%p437_p9)
}
  0x16   :  { %26 = dma.hbm_to_vmem [thread:$0]  %s579_s0, 256, %s21_s27, [#allocation4], %s489_s29, %s489_s29, %s490_s30  }
  0x17   :  { %s491_s13 = smov [#allocation8]  }
  0x18   :  { %s50_s14 = sshll.u32 %s491_s13, 4  ;;  %s51_s14 = int_to_ptr.vmem [resolvable:$true] %s50_s14 }
  0x19   :  { %s449_s15 = scalar_lea.vmem %s51_s14, 512  ;;  %p454_p11 = scmp.lt.s32.totalorder %s51_s14, %s51_s14 }
  0x1a   :  { %p450_p10 = scmp.ne.s32.totalorder %s51_s14, %s449_s15  ;;  %p455_p12 = scmp.lt.s32.totalorder %s449_s15, %s449_s15 }
  0x1c   :  { %p456_p13 = por %p455_p12, %p454_p11 }
  0x1e   :  { %p457_p0 = pnand %p456_p13, %p450_p10 }
  0x20   :  { %460 = shalt.err (!%p457_p0)
}
  0x21   :  { %56 = dma.hbm_to_vmem [thread:$0]  %s584_s5, 512, %s51_s14, [#allocation7], %s489_s29, %s489_s29, %s490_s30  }
  0x22   :  { %481 = dma.done.wait [#allocation4], 256  }
  0x23   :  { %482 = vsyncadd [#allocation4], 4294967040 }
  0x24   :  { %483 = dma.done.wait [#allocation7], 1024  }
  0x25   :  { %484 = vsyncadd [#allocation7], 4294966272  ;;  %vm85_vm0 = vcmask 261120   ;;  %v77_v0 = vld [vmem:[#allocation6 + $0x18] sm:$0xff]  ;;  %v76_v1 = vld [vmem:[#allocation6 + $0x10] sm:$0xff] }
  0x26   :  { %365 = vmatprep.subr.mxu0 %v77_v0  ;;  %v72_v2 = vld [vmem:[#allocation3] sm:$0xff]  ;;  %v75_v3 = vld [vmem:[#allocation6 + $0x8] sm:$0xff]  ;;  %v74_v4 = vld [vmem:[#allocation6] sm:$0xff] }
  0x27   :  { %366 = vmatpush3.msra.mxu0 %v77_v0  ;;  %373 = vmatprep.mubr.msk.f32.mxu0 %vm85_vm0, %v72_v2  ;;  %v73_v5 = vld [vmem:[#allocation3 + $0x8] sm:$0xff]  ;;  %v345_v6 = vld [vmem:[%s581_s2] ss:$0 sm:$0xff]  ;;  %v234_v28 = vld [vmem:[#allocation8 + $0x10] sm:$0xff] }
  0x28   :  { %367 = vmatprep.subr.mxu0 %v76_v1  ;;  %v235_v27 = vld [vmem:[#allocation8 + $0x18] sm:$0xff]  ;;  %v233_v29 = vld [vmem:[#allocation8 + $0x8] sm:$0xff]  ;;  %v232_v30 = vld [vmem:[#allocation8] sm:$0xff] }
  0x29   :  { %368 = vmatpush3.msra.mxu0 %v76_v1  ;;  %376 = vmatprep.subr.mxu1 %v235_v27  ;;  %v348_v49 = vld [vmem:[%s582_s3] ss:$0 sm:$0xff] }
  0x2a   :  { %369 = vmatprep.subr.mxu0 %v75_v3  ;;  %377 = vmatpush3.msra.mxu1 %v235_v27  ;;  %v349_v51 = vld [vmem:[%s583_s4] ss:$0 sm:$0xff]  ;;  %s492_s4 = smov [#allocation9]  }
  0x2b   :  { %370 = vmatpush3.msra.mxu0 %v75_v3  ;;  %378 = vmatprep.subr.mxu1 %v234_v28  ;;  %v350_v61 = vld [vmem:[%s585_s6] ss:$0 sm:$0xff]  ;;  %s332_s21 = sshll.u32 %s492_s4, 4  ;;  %s333_s21 = int_to_ptr.vmem [resolvable:$true] %s332_s21 }
  0x2c   :  { %371 = vmatprep.subr.mxu0 %v74_v4  ;;  %379 = vmatpush3.msra.mxu1 %v234_v28  ;;  %s461_s22 = scalar_lea.vmem %s333_s21, 256  ;;  %p466_p2 = scmp.lt.s32.totalorder %s333_s21, %s333_s21 }
  0x2d   :  { %372 = vmatpush3.msra.mxu0 %v74_v4  ;;  %380 = vmatprep.subr.mxu1 %v233_v29  ;;  %p462_p1 = scmp.ne.s32.totalorder %s333_s21, %s461_s22  ;;  %p467_p3 = scmp.lt.s32.totalorder %s461_s22, %s461_s22 }
  0x2e   :  { %374 = vmatmul.mubr.msk.f32.vlgmr.msra.gmra.mxu0 %vm85_vm0, %v73_v5  ;;  %381 = vmatpush3.msra.mxu1 %v233_v29 }
  0x2f   :  { %382 = vmatprep.subr.mxu1 %v232_v30  ;;  %p468_p4 = por %p467_p3, %p466_p2 }
  0x30   :  { %383 = vmatpush3.msra.mxu1 %v232_v30 }
  0x31   :  { %p469_p5 = pnand %p468_p4, %p462_p1 }
  0xee   :  { %v375_v7 = vpop.f32.mrf.mxu0 }
  0xef   :  { %v164_v8 = vadd.f32 %v375_v7, %v345_v6 }
  0xf0   :  { %v158_v9 = vpop.f32.mrf.mxu0 }
  0xf1   :  { %v170_v10 = vmul.f32 0.70710677, %v164_v8  ;;  %v159_v11 = vadd.f32 %v345_v6, %v158_v9  ;;  %v168_v16 = vmul.f32 0.5, %v164_v8 }
  0xf3   :  { %393 = verf.f32 %v170_v10  ;;  %v169_v12 = vmul.f32 0.70710677, %v159_v11  ;;  %v167_v17 = vmul.f32 0.5, %v159_v11 }
  0xf5   :  { %395 = verf.f32 %v169_v12 }
 0x100   :  { %v394_v13 = vpop.eup %393 }
 0x101   :  { %v174_v14 = vadd.f32 1.0, %v394_v13 }
 0x102   :  { %v396_v15 = vpop.eup %395 }
 0x103   :  { %v173_v18 = vadd.f32 1.0, %v396_v15  ;;  %v176_v19 = vmul.f32 %v174_v14, %v168_v16 }
 0x105   :  { %v175_v20 = vmul.f32 %v173_v18, %v167_v17  ;;  %v187_v24 = vmul.f32 %v176_v19, %v176_v19  ;;  %v180_v25 = vsel %vm85_vm0, %v176_v19, 0.0 }
 0x107   :  { %v177_v21 = vsel %vm85_vm0, %v175_v20, 0.0  ;;  %v186_v22 = vmul.f32 %v175_v20, %v175_v20  ;;  %v191_v26 = vsel %vm85_vm0, %v187_v24, 0.0 }
 0x108   :  { %178 = vadd.xlane.f32.xlu0 %v177_v21 }
 0x109   :  { %v188_v23 = vsel %vm85_vm0, %v186_v22, 0.0 }
 0x10a   :  { %189 = vadd.xlane.f32.xlu1 %v188_v23 }
 0x10c   :  { %181 = vadd.xlane.f32.xlu0 %v180_v25 }
 0x10e   :  { %192 = vadd.xlane.f32.xlu1 %v191_v26 }
 0x191   :  { %v179_v31 = vpop.xlane.xlu0 %178 }
 0x192   :  { %v184_v32 = vmul.f32 0.03125, %v179_v31 }
 0x193   :  { %v190_v33 = vpop.xlane.xlu1 %189 }
 0x194   :  { %v196_v34 = vmul.f32 %v184_v32, %v184_v32  ;;  %v194_v35 = vmul.f32 0.03125, %v190_v33  ;;  %v202_v47 = vsub.f32 %v175_v20, %v184_v32 }
 0x195   :  { %v182_v36 = vpop.xlane.xlu0 %181 }
 0x196   :  { %v198_v37 = vsub.f32 %v194_v35, %v196_v34  ;;  %v185_v38 = vmul.f32 0.03125, %v182_v36 }
 0x197   :  { %v193_v39 = vpop.xlane.xlu1 %192 }
 0x198   :  { %v200_v40 = vmax.f32 %v198_v37, 0.0  ;;  %v197_v41 = vmul.f32 %v185_v38, %v185_v38  ;;  %v195_v42 = vmul.f32 0.03125, %v193_v39  ;;  %v203_v53 = vsub.f32 %v176_v19, %v185_v38 }
 0x19a   :  { %v204_v43 = vadd.f32 1e-12, %v200_v40  ;;  %v199_v44 = vsub.f32 %v195_v42, %v197_v41 }
 0x19c   :  { %397 = vrsqrt.f32 %v204_v43  ;;  %v201_v45 = vmax.f32 %v199_v44, 0.0 }
 0x19e   :  { %v205_v46 = vadd.f32 1e-12, %v201_v45 }
 0x1a0   :  { %399 = vrsqrt.f32 %v205_v46 }
 0x1a9   :  { %v398_v48 = vpop.eup %397 }
 0x1aa   :  { %v208_v50 = vmul.f32 %v398_v48, %v202_v47 }
 0x1ac   :  { %v217_v52 = vmul.f32 %v348_v49, %v208_v50 }
 0x1ad   :  { %v400_v54 = vpop.eup %399 }
 0x1ae   :  { %v226_v55 = vadd.f32 %v349_v51, %v217_v52  ;;  %v209_v56 = vmul.f32 %v400_v54, %v203_v53 }
 0x1b0   :  { %228 = vst.msk [vmem:[#allocation2] sm:$0xff] %vm85_vm0, %v226_v55  ;;  %v218_v57 = vmul.f32 %v348_v49, %v209_v56 }
 0x1b2   :  { %v227_v58 = vadd.f32 %v349_v51, %v218_v57 }
 0x1b4   :  { %229 = vst.msk [vmem:[#allocation2 + $0x8] sm:$0xff] %vm85_vm0, %v227_v58 }
 0x1b7   :  { %v230_v59 = vld [vmem:[#allocation2] sm:$0xff] }
 0x1b8   :  { %384 = vmatprep.mubr.msk.f32.mxu1 %vm85_vm0, %v230_v59 }
 0x1bb   :  { %v231_v60 = vld [vmem:[#allocation2 + $0x8] sm:$0xff] }
 0x1bc   :  { %385 = vmatmul.mubr.msk.f32.vlgmr.msra.gmra.mxu1 %vm85_vm0, %v231_v60 }
 0x27c   :  { %v386_v62 = vpop.f32.mrf.mxu1 }
 0x27d   :  { %v322_v63 = vadd.f32 %v386_v62, %v350_v61 }
 0x27e   :  { %v316_v0 = vpop.f32.mrf.mxu1 }
 0x27f   :  { %326 = vst [vmem:[#allocation9 + $0x8] sm:$0xff] %v322_v63  ;;  %v317_v1 = vadd.f32 %v350_v61, %v316_v0 }
 0x281   :  { %325 = vst [vmem:[#allocation9] sm:$0xff] %v317_v1 }
 0x282   :  { %472 = shalt.err (!%p469_p5)
}
 0x283   :  { %338 = dma.vmem_to_hbm [thread:$0]  %s333_s21, 256, %s586_s7, [#allocation5], %s489_s29, %s489_s29, %s490_s30  }
 0x284   :  { %485 = dma.done.wait [#allocation5], 256  }
 0x285   :  { %486 = vsyncadd [#allocation5], 4294967040 }
 0x286   :  { %342 = vsyncpa [#allocation4], 1 }
 0x287   :  { %343 = vsyncpa [#allocation7], 1 }
 0x288   :  { %344 = vsyncpa [#allocation5], 1 }

</bundles_post_ra>
